<compile_context>
chip_gen: v7x
topology: tpu7x:2x2x1
jax: 0.10.0
libtpu: 0.0.40
codegen_flags: <defaults>
</compile_context>

<pallas_src>
import functools

import jax
import jax.numpy as jnp
from jax.experimental import pallas as pl
from jax.experimental.pallas import tpu as pltpu


def _leaky_relu(x, negative_slope=0.1):
    # Equivalent to where(x>=0, x, slope*x) for 0 < slope < 1; fewer VALU ops.
    return jnp.maximum(x, negative_slope * x)


def user_tower_kernel(x_ref, w1_ref, b1_ref, w2_ref, b2_ref, w3_ref, b3_ref,
                      o_ref):
    """Fused MLP: (x@W1+b1) -> LReLU -> (@W2+b2) -> LReLU -> (@W3+b3)."""
    x = x_ref[...]
    if x.dtype != jnp.bfloat16:          # accept bf16 inputs without recast
        x = x.astype(jnp.bfloat16)

    h1 = jnp.dot(x, w1_ref[...], preferred_element_type=jnp.float32)
    h1 = _leaky_relu(h1 + b1_ref[...])                       # [bb, 256]

    h2 = jnp.dot(h1.astype(jnp.bfloat16), w2_ref[...],
                 preferred_element_type=jnp.float32)
    h2 = _leaky_relu(h2 + b2_ref[...])                       # [bb, 128]

    h3 = jnp.dot(h2.astype(jnp.bfloat16), w3_ref[...],
                 preferred_element_type=jnp.float32)
    o_ref[...] = (h3 + b3_ref[...]).astype(o_ref.dtype)      # [bb, E]


def _round_up(v, m):
    return ((v + m - 1) // m) * m


def prepare_params(params):
    """One-time preprocessing, hoisted out of the per-call path.

    Weights -> bf16 (MXU operands), biases -> f32 [1, out] (post-acc add).
    Call once at init / checkpoint load, reuse the returned pytree.
    """
    return {
        "w1": params["w1"].astype(jnp.bfloat16),
        "b1": params["b1"].reshape(1, -1).astype(jnp.float32),
        "w2": params["w2"].astype(jnp.bfloat16),
        "b2": params["b2"].reshape(1, -1).astype(jnp.float32),
        "w3": params["w3"].astype(jnp.bfloat16),
        "b3": params["b3"].reshape(1, -1).astype(jnp.float32),
    }


@functools.partial(jax.jit,
                   static_argnames=("block_b", "min_grid_steps", "out_dtype"))
def user_tower_v3(x, params, block_b=None, min_grid_steps=1,
                  out_dtype=jnp.float32):
    """Forward pass of UserTowerV3 (inference mode).

    x:      [B, user_input_size]   (f32 or bf16)
    params: output of prepare_params(): w1 [Din,256] bf16, b1 [1,256] f32,
            w2 [256,128] bf16, b2 [1,128] f32, w3 [128,E] bf16, b3 [1,E] f32.
    block_b:        batch tile; default 2048 if Din<=128 else 1024.
    min_grid_steps: set to 2 on v7x to shard the batch across both TCs.
    """
    B, Din = x.shape
    w1, b1 = params["w1"], params["b1"]
    w2, b2 = params["w2"], params["b2"]
    w3, b3 = params["w3"], params["b3"]
    H1, H2 = w1.shape[1], w2.shape[1]
    E = w3.shape[1]

    # ---- batch tile: big (HBM / step-overhead bound), load-balanced ----
    if block_b is None:
        block_b = 2048 if Din <= 128 else 1024
    bb = min(block_b, _round_up(B, 8))
    steps = max(pl.cdiv(B, bb), min_grid_steps)
    bb = max(8, _round_up(pl.cdiv(B, steps), 8))   # balance tiles across steps
    steps = pl.cdiv(B, bb)
    grid = (steps,)            # ragged last block handled by Pallas (no pad)

    # ---- VMEM budget derived from the actual footprint (v7x: 64 MiB/TC) ----
    x_bytes = x.dtype.itemsize
    out_bytes = jnp.dtype(out_dtype).itemsize
    w_elems = Din * H1 + H1 * H2 + H2 * E
    vmem_need = (2 * bb * Din * x_bytes          # input, double-buffered
                 + 2 * bb * E * out_bytes        # output, double-buffered
                 + 2 * 2 * w_elems               # bf16 weights, double-buffered
                 + 2 * 4 * (H1 + H2 + E)         # f32 biases
                 + 4 * bb * (H1 + H2 + E))       # f32 intermediates
    vmem_limit = min(max(int(vmem_need * 1.5) + (4 << 20), 16 << 20), 64 << 20)

    # ---- advisory cost model for the XLA scheduler ----
    flops = 2 * B * w_elems
    bytes_accessed = (B * Din * x_bytes + 2 * w_elems + 4 * (H1 + H2 + E)
                      + B * E * out_bytes)

    out = pl.pallas_call(
        user_tower_kernel,
        out_shape=jax.ShapeDtypeStruct((B, E), out_dtype),
        grid_spec=pltpu.PrefetchScalarGridSpec(
            num_scalar_prefetch=0,
            grid=grid,
            in_specs=[
                # batch tile of the input
                pl.BlockSpec((bb, Din), lambda i: (i, 0)),
                # full weights / biases, resident across the whole grid
                pl.BlockSpec((Din, H1), lambda i: (0, 0)),
                pl.BlockSpec((1, H1), lambda i: (0, 0)),
                pl.BlockSpec((H1, H2), lambda i: (0, 0)),
                pl.BlockSpec((1, H2), lambda i: (0, 0)),
                pl.BlockSpec((H2, E), lambda i: (0, 0)),
                pl.BlockSpec((1, E), lambda i: (0, 0)),
            ],
            # Direct (B, E) output: full-lane stores when E%128==0, otherwise
            # lane-masked stores — no pad-to-128 write + wrapper-slice passes.
            out_specs=pl.BlockSpec((bb, E), lambda i: (i, 0)),
        ),
        compiler_params=pltpu.CompilerParams(
            dimension_semantics=("parallel",),
            vmem_limit_bytes=vmem_limit,
        ),
        cost_estimate=pl.CostEstimate(
            flops=flops, transcendentals=0, bytes_accessed=bytes_accessed),
    )(x, w1, b1, w2, b2, w3, b3)

    return out


def init_params(key, user_input_size, embedding_size):
    """Deterministic parameter init (uniform, like PyTorch's default Linear init)."""
    dims = [(user_input_size, 256), (256, 128), (128, embedding_size)]
    params = {}
    for idx, (din, dout) in enumerate(dims, start=1):
        key, kw, kb = jax.random.split(key, 3)
        bound = 1.0 / jnp.sqrt(jnp.float32(din))
        params[f"w{idx}"] = jax.random.uniform(
            kw, (din, dout), jnp.float32, minval=-bound, maxval=bound)
        params[f"b{idx}"] = jax.random.uniform(
            kb, (1, dout), jnp.float32, minval=-bound, maxval=bound)
    return params


def reference_forward(x, params, mxu_dtype=jnp.float32):
    """Pure-JAX reference of the eval-mode PyTorch forward.

    With mxu_dtype=bfloat16 it mimics the kernel's mixed-precision scheme
    (bf16 operands, f32 accumulation, f32 bias add).
    """
    def dot(a, w):
        return jnp.dot(a.astype(mxu_dtype), w.astype(mxu_dtype),
                       preferred_element_type=jnp.float32)

    h = dot(x, params["w1"]) + params["b1"]
    h = jnp.maximum(h, 0.1 * h)
    h = dot(h, params["w2"]) + params["b2"]
    h = jnp.maximum(h, 0.1 * h)
    return dot(h, params["w3"]) + params["b3"]


if __name__ == "__main__":
    master_key = jax.random.PRNGKey(0)

    def run_case(user_input_size, embedding_size, batch,
                 block_b=None, min_grid_steps=1, case_id=0):
        kx, kp = jax.random.split(jax.random.fold_in(master_key, case_id))
        x = jax.random.normal(kx, (batch, user_input_size), jnp.float32)
        raw = init_params(kp, user_input_size, embedding_size)
        prepared = prepare_params(raw)   # hoisted weight preprocessing

        out = user_tower_v3(x, prepared, block_b=block_b,
                            min_grid_steps=min_grid_steps)
        out = jax.block_until_ready(out)
        assert out.shape == (batch, embedding_size)

        # Exact-scheme reference (bf16 operands, f32 accumulation): tight check.
        ref_bf16 = reference_forward(x, raw, mxu_dtype=jnp.bfloat16)
        assert jnp.allclose(out, ref_bf16, atol=2e-3, rtol=2e-3), \
            f"case {case_id}: mismatch vs bf16-accumulation reference"

        # Full-f32 reference: loose sanity check on overall numerics.
        ref_f32 = reference_forward(x, raw, mxu_dtype=jnp.float32)
        assert jnp.allclose(out, ref_f32, atol=1e-1, rtol=1e-1), \
            f"case {case_id}: mismatch vs f32 reference"

    # Case 0: E < 128 -> lane-masked direct output, single grid step.
    run_case(user_input_size=32, embedding_size=32, batch=32, case_id=0)

    # Case 1: E = 128 -> full-lane output; balanced multi-step grid with a
    # ragged last tile (exercises the v7x-style min_grid_steps path).
    run_case(user_input_size=64, embedding_size=128, batch=40,
             block_b=16, min_grid_steps=2, case_id=1)

    print("KERNEL_OK")
</pallas_src>

<mosaic_0001>
module attributes {stable_mosaic.version = 11 : i64} {
  func.func @user_tower_kernel(%arg0: i32, %arg1: memref<32x32xf32, #tpu.memory_space<vmem>>, %arg2: memref<32x256xbf16, #tpu.memory_space<vmem>>, %arg3: memref<1x256xf32, #tpu.memory_space<vmem>>, %arg4: memref<256x128xbf16, #tpu.memory_space<vmem>>, %arg5: memref<1x128xf32, #tpu.memory_space<vmem>>, %arg6: memref<128x32xbf16, #tpu.memory_space<vmem>>, %arg7: memref<1x32xf32, #tpu.memory_space<vmem>>, %arg8: memref<32x32xf32, #tpu.memory_space<vmem>>) attributes {dimension_semantics = [#tpu.dimension_semantics<parallel>], iteration_bounds = array<i64: 1>, scalar_prefetch = 0 : i64, scratch_operands = 0 : i64, tpu.core_type = #tpu.core_type<tc>, window_params = [{transform_indices = @transform_0, window_bounds = array<i64: 32, 32>}, {pipeline_mode = #tpu.pipeline_mode<synchronous>, transform_indices = @transform_1, window_bounds = array<i64: 32, 256>}, {pipeline_mode = #tpu.pipeline_mode<synchronous>, transform_indices = @transform_2, window_bounds = array<i64: 1, 256>}, {pipeline_mode = #tpu.pipeline_mode<synchronous>, transform_indices = @transform_3, window_bounds = array<i64: 256, 128>}, {pipeline_mode = #tpu.pipeline_mode<synchronous>, transform_indices = @transform_4, window_bounds = array<i64: 1, 128>}, {pipeline_mode = #tpu.pipeline_mode<synchronous>, transform_indices = @transform_5, window_bounds = array<i64: 128, 32>}, {pipeline_mode = #tpu.pipeline_mode<synchronous>, transform_indices = @transform_6, window_bounds = array<i64: 1, 32>}, {transform_indices = @transform_7, window_bounds = array<i64: 32, 32>}]} {
    %c0 = arith.constant 0 : index
    %c0_0 = arith.constant 0 : index
    %0 = vector.load %arg1[%c0, %c0_0] : memref<32x32xf32, #tpu.memory_space<vmem>>, vector<32x32xf32>
    %1 = arith.truncf %0 : vector<32x32xf32> to vector<32x32xbf16>
    %c0_1 = arith.constant 0 : index
    %c0_2 = arith.constant 0 : index
    %2 = vector.load %arg2[%c0_1, %c0_2] : memref<32x256xbf16, #tpu.memory_space<vmem>>, vector<32x256xbf16>
    %cst = arith.constant dense<0.000000e+00> : vector<32x256xf32>
    %3 = tpu.matmul %1, %2, %cst {dimension_numbers = #tpu.dot_dimension_numbers<[1], [0], [0], [1], [0, 0, 1, 1], [], []>} : vector<32x32xbf16>, vector<32x256xbf16>, vector<32x256xf32> -> vector<32x256xf32>
    %c0_3 = arith.constant 0 : index
    %c0_4 = arith.constant 0 : index
    %4 = vector.load %arg3[%c0_3, %c0_4] : memref<1x256xf32, #tpu.memory_space<vmem>>, vector<1x256xf32>
    %5 = vector.broadcast %4 : vector<1x256xf32> to vector<32x256xf32>
    %6 = arith.addf %3, %5 : vector<32x256xf32>
    %cst_5 = arith.constant 1.000000e-01 : f32
    %7 = vector.broadcast %cst_5 : f32 to vector<32x256xf32>
    %8 = arith.mulf %7, %6 : vector<32x256xf32>
    %9 = arith.maximumf %6, %8 : vector<32x256xf32>
    %10 = arith.truncf %9 : vector<32x256xf32> to vector<32x256xbf16>
    %c0_6 = arith.constant 0 : index
    %c0_7 = arith.constant 0 : index
    %11 = vector.load %arg4[%c0_6, %c0_7] : memref<256x128xbf16, #tpu.memory_space<vmem>>, vector<256x128xbf16>
    %cst_8 = arith.constant dense<0.000000e+00> : vector<32x128xf32>
    %12 = tpu.matmul %10, %11, %cst_8 {dimension_numbers = #tpu.dot_dimension_numbers<[1], [0], [0], [1], [0, 0, 1, 1], [], []>} : vector<32x256xbf16>, vector<256x128xbf16>, vector<32x128xf32> -> vector<32x128xf32>
    %c0_9 = arith.constant 0 : index
    %c0_10 = arith.constant 0 : index
    %13 = vector.load %arg5[%c0_9, %c0_10] : memref<1x128xf32, #tpu.memory_space<vmem>>, vector<1x128xf32>
    %14 = vector.broadcast %13 : vector<1x128xf32> to vector<32x128xf32>
    %15 = arith.addf %12, %14 : vector<32x128xf32>
    %cst_11 = arith.constant 1.000000e-01 : f32
    %16 = vector.broadcast %cst_11 : f32 to vector<32x128xf32>
    %17 = arith.mulf %16, %15 : vector<32x128xf32>
    %18 = arith.maximumf %15, %17 : vector<32x128xf32>
    %19 = arith.truncf %18 : vector<32x128xf32> to vector<32x128xbf16>
    %c0_12 = arith.constant 0 : index
    %c0_13 = arith.constant 0 : index
    %20 = vector.load %arg6[%c0_12, %c0_13] : memref<128x32xbf16, #tpu.memory_space<vmem>>, vector<128x32xbf16>
    %cst_14 = arith.constant dense<0.000000e+00> : vector<32x32xf32>
    %21 = tpu.matmul %19, %20, %cst_14 {dimension_numbers = #tpu.dot_dimension_numbers<[1], [0], [0], [1], [0, 0, 1, 1], [], []>} : vector<32x128xbf16>, vector<128x32xbf16>, vector<32x32xf32> -> vector<32x32xf32>
    %c0_15 = arith.constant 0 : index
    %c0_16 = arith.constant 0 : index
    %22 = vector.load %arg7[%c0_15, %c0_16] : memref<1x32xf32, #tpu.memory_space<vmem>>, vector<1x32xf32>
    %23 = vector.broadcast %22 : vector<1x32xf32> to vector<32x32xf32>
    %24 = arith.addf %21, %23 : vector<32x32xf32>
    %c0_17 = arith.constant 0 : index
    %c0_18 = arith.constant 0 : index
    %25 = vector.load %arg8[%c0_17, %c0_18] : memref<32x32xf32, #tpu.memory_space<vmem>>, vector<32x32xf32>
    tpu.vector_store %arg8[%c0_17, %c0_18], %24 {strides = array<i32>} : memref<32x32xf32, #tpu.memory_space<vmem>>, vector<32x32xf32>,
    return
  }
  func.func @transform_0(%arg0: i32) -> (i32, i32) {
    %c0_i32 = arith.constant 0 : i32
    %c0_i32_0 = arith.constant 0 : i32
    return %arg0, %c0_i32 : i32, i32
  }
  func.func @transform_1(%arg0: i32) -> (i32, i32) {
    %c0_i32 = arith.constant 0 : i32
    %c0_i32_0 = arith.constant 0 : i32
    %c0_i32_1 = arith.constant 0 : i32
    return %c0_i32, %c0_i32_0 : i32, i32
  }
  func.func @transform_2(%arg0: i32) -> (i32, i32) {
    %c0_i32 = arith.constant 0 : i32
    %c0_i32_0 = arith.constant 0 : i32
    %c0_i32_1 = arith.constant 0 : i32
    return %c0_i32, %c0_i32_0 : i32, i32
  }
  func.func @transform_3(%arg0: i32) -> (i32, i32) {
    %c0_i32 = arith.constant 0 : i32
    %c0_i32_0 = arith.constant 0 : i32
    %c0_i32_1 = arith.constant 0 : i32
    return %c0_i32, %c0_i32_0 : i32, i32
  }
  func.func @transform_4(%arg0: i32) -> (i32, i32) {
    %c0_i32 = arith.constant 0 : i32
    %c0_i32_0 = arith.constant 0 : i32
    %c0_i32_1 = arith.constant 0 : i32
    return %c0_i32, %c0_i32_0 : i32, i32
  }
  func.func @transform_5(%arg0: i32) -> (i32, i32) {
    %c0_i32 = arith.constant 0 : i32
    %c0_i32_0 = arith.constant 0 : i32
    %c0_i32_1 = arith.constant 0 : i32
    return %c0_i32, %c0_i32_0 : i32, i32
  }
  func.func @transform_6(%arg0: i32) -> (i32, i32) {
    %c0_i32 = arith.constant 0 : i32
    %c0_i32_0 = arith.constant 0 : i32
    %c0_i32_1 = arith.constant 0 : i32
    return %c0_i32, %c0_i32_0 : i32, i32
  }
  func.func @transform_7(%arg0: i32) -> (i32, i32) {
    %c0_i32 = arith.constant 0 : i32
    %c0_i32_0 = arith.constant 0 : i32
    return %arg0, %c0_i32 : i32, i32
  }
}

</mosaic_0001>

<bundles_post_ra>
// kernel: user_tower_v3.1
= control target key start
LH: loop header
LB: loop body
LE: loop exit
PB: predicated region body
PF: predicated region fallthrough
CT: control target
= control target key end

     0   :  { %12 = vsyncpa [#allocation3], 0  ;;  %s808_s0 = inlined_call_operand.vmem [shape: f32[32,32], index: 0, kind: input, shape index: {}]   ;;  %s809_s1 = inlined_call_operand.vmem [shape: bf16[32,256], index: 1, kind: input, shape index: {}]   ;;  %s810_s2 = inlined_call_operand.vmem [shape: f32[1,256], index: 2, kind: input, shape index: {}]   ;;  %s811_s3 = inlined_call_operand.hbm [shape: bf16[256,128], index: 3, kind: input, shape index: {}]   ;;  %s812_s4 = inlined_call_operand.vmem [shape: f32[1,128], index: 4, kind: input, shape index: {}]   ;;  %s813_s5 = inlined_call_operand.vmem [shape: bf16[128,32], index: 5, kind: input, shape index: {}]   ;;  %s814_s6 = inlined_call_operand.vmem [shape: f32[1,32], index: 6, kind: input, shape index: {}]   ;;  %s815_s7 = inlined_call_operand.hbm [shape: f32[32,32], index: 7, kind: output, shape index: {}]  }
   0x1   :  { %13 = vsyncpa [#allocation4], 0  ;;  %s674_s24 = smov [#allocation2]   ;;  %s626_s28 = scalar_lea.hbm %s811_s3, 2048 }
   0x2   :  { %s25_s25 = sshll.u32 %s674_s24, 4  ;;  %p627_p0 = scmp.ne.s32.totalorder %s811_s3, %s626_s28  ;;  %s26_s25 = int_to_ptr.vmem [resolvable:$true] %s25_s25 }
   0x3   :  { %p630_p1 = scmp.lt.u32.totalorder %s626_s28, %s811_s3 }
   0x5   :  { %p632_p2 = pnand %p630_p1, %p627_p0 }
   0x7   :  { %635 = shalt.err (!%p632_p2)
}
   0x8   :  { %s636_s10 = scalar_lea.vmem %s26_s25, 2048  ;;  %p641_p4 = scmp.lt.s32.totalorder %s26_s25, %s26_s25 }
   0x9   :  { %p637_p3 = scmp.ne.s32.totalorder %s26_s25, %s636_s10  ;;  %p642_p5 = scmp.lt.s32.totalorder %s636_s10, %s636_s10 }
   0xb   :  { %p643_p6 = por %p642_p5, %p641_p4 }
   0xd   :  { %p644_p7 = pnand %p643_p6, %p637_p3 }
   0xf   :  { %647 = shalt.err (!%p644_p7)
}
  0x10   :  { %s675_s11 = smov 64   ;;  %s676_s12 = smov 4  }
  0x11   :  { %31 = dma.hbm_to_vmem [thread:$0]  %s811_s3, 2048, %s26_s25, [#allocation3], %s675_s11, %s675_s11, %s676_s12  }
  0x12   :  { %670 = dma.done.wait [#allocation3], 2048  }
  0x13   :  { %671 = vsyncadd [#allocation3], 4294965248  ;;  %v677_v0 = vmov 0   ;;  %v596_v1 = vld [vmem:[%s809_s1 + $0x4] ss:$8 sps:$4 sm:$0xff]   ;;  %vm84_vm0 = vcmask 261120   ;;  %v54_v30 = vlaneseq }
  0x14   :  { %123 = vmatprep.mubr.bf16.mxu0 %v677_v0  ;;  %v598_v2 = vld [vmem:[%s809_s1] ss:$8 sps:$4 sm:$0xff]   ;;  %91 = vmatprep.subr.bf16.mxu0 %v596_v1  ;;  %v599_v3 = vld [vmem:[%s809_s1 + $0x14] ss:$8 sps:$4 sm:$0xff]   ;;  %v601_v4 = vld [vmem:[%s809_s1 + $0x10] ss:$8 sps:$4 sm:$0xff]  }
  0x15   :  { %92 = vmatpush1.bf16.msra.mxu0 %v598_v2  ;;  %v42_v5 = vld [vmem:[%s808_s0] sm:$0xff]  ;;  %v43_v6 = vld [vmem:[%s808_s0 + $0x8] sm:$0xff]  ;;  %v606_v12 = vld [vmem:[#allocation2 + $0x50] sm:$0xff]   ;;  %v55_v31 = vshrl.u32 %v54_v30, 7  ;;  %s678_s23 = smov [#allocation5]  }
  0x16   :  { %93 = vmatprep.subr.bf16.mxu0 %v599_v3  ;;  %v602_v7 = vld [vmem:[#allocation2 + $0x40] sm:$0xff]   ;;  %v46_v9 = vpack.c.bf16 %v43_v6, %v42_v5  ;;  %v604_v10 = vld [vmem:[#allocation2 + $0x48] sm:$0xff]   ;;  %v44_v13 = vld [vmem:[%s808_s0 + $0x10] sm:$0xff]  ;;  %s487_s24 = sshll.u32 %s678_s23, 4  ;;  %s488_s24 = int_to_ptr.vmem [resolvable:$true] %s487_s24 }
  0x17   :  { %v603_v8 = vld [vmem:[#allocation2] sm:$0xff]   ;;  %531 = vmatprep.subr.bf16.mxu1 %v602_v7  ;;  %v605_v11 = vld [vmem:[#allocation2 + $0x8] sm:$0xff]   ;;  %v45_v14 = vld [vmem:[%s808_s0 + $0x18] sm:$0xff]  ;;  %v56_v32 = vsub.s32 0, %v55_v31  ;;  %v60_v34 = vsub.s32 1, %v55_v31  ;;  %p653_p9 = scmp.lt.s32.totalorder %s488_s24, %s488_s24 }
  0x18   :  { %532 = vmatpush3.bf16.msra.mxu1 %v603_v8  ;;  %v607_v15 = vld [vmem:[#allocation2 + $0x10] sm:$0xff]   ;;  %v608_v16 = vld [vmem:[#allocation2 + $0x58] sm:$0xff]   ;;  %v47_v18 = vpack.c.bf16 %v45_v14, %v44_v13  ;;  %v610_v19 = vld [vmem:[#allocation2 + $0x60] sm:$0xff]  }
  0x19   :  { %94 = vmatpush1.bf16.msra.mxu0 %v601_v4  ;;  %533 = vmatprep.subr.bf16.mxu1 %v604_v10  ;;  %v609_v17 = vld [vmem:[#allocation2 + $0x18] sm:$0xff]   ;;  %v611_v20 = vld [vmem:[#allocation2 + $0x20] sm:$0xff]   ;;  %v612_v21 = vld [vmem:[#allocation2 + $0x68] sm:$0xff]  }
  0x1a   :  { %v613_v22 = vld [vmem:[#allocation2 + $0x28] sm:$0xff]   ;;  %v614_v23 = vld [vmem:[#allocation2 + $0x70] sm:$0xff]   ;;  %v616_v25 = vld [vmem:[#allocation2 + $0x78] sm:$0xff]  }
  0x1b   :  { %v615_v24 = vld [vmem:[#allocation2 + $0x30] sm:$0xff]   ;;  %v617_v26 = vld [vmem:[#allocation2 + $0x38] sm:$0xff]   ;;  %v618_v27 = vld [vmem:[%s813_s5] sm:$0xff]  }
  0x1c   :  { %503 = vmatmul.mubr.msk.bf16.vlgmr.msra.gmra.mrb[0].mxu0 %vm84_vm0, %v46_v9  ;;  %534 = vmatpush3.bf16.msra.mxu1 %v605_v11  ;;  %v619_v28 = vld [vmem:[%s813_s5 + $0x8] sm:$0xff]   ;;  %v620_v29 = vld [vmem:[%s813_s5 + $0x10] sm:$0xff]   ;;  %v52_v33 = vld [vmem:[%s810_s2] sm:$0x3] }
  0x1d   :  { %133 = vmatprep.mubr.bf16.mxu0 %v677_v0  ;;  %535 = vmatprep.subr.bf16.mxu1 %v606_v12  ;;  %v57_v35 = vrot.slane %v52_v33, %v56_v32  ;;  %v61_v36 = vrot.slane %v52_v33, %v60_v34  ;;  %v621_v9 = vld [vmem:[%s813_s5 + $0x18] sm:$0xff]   ;;  %v622_v10 = vld [vmem:[%s813_s5 + $0x20] sm:$0xff]   ;;  %v623_v11 = vld [vmem:[%s813_s5 + $0x28] sm:$0xff]  }
  0x1e   :  { %569 = vmatprep.subr.bf16.mxu0 %v618_v27  ;;  %v624_v12 = vld [vmem:[%s813_s5 + $0x30] sm:$0xff]   ;;  %v625_v13 = vld [vmem:[%s813_s5 + $0x38] sm:$0xff]  }
  0x1f   :  { %570 = vmatpush3.bf16.msra.mxu0 %v618_v27 }
  0x20   :  { %536 = vmatpush3.bf16.msra.mxu1 %v607_v15  ;;  %571 = vmatprep.subr.bf16.mxu0 %v619_v28  ;;  %v505_v15 = vld [vmem:[%s812_s4] ss:$0 sm:$0xff] }
  0x21   :  { %537 = vmatprep.subr.bf16.mxu1 %v608_v16 }
  0x23   :  { %572 = vmatpush3.bf16.msra.mxu0 %v619_v28 }
  0x24   :  { %504 = vmatmul.mubr.msk.bf16.gmra.mrb[4].mxu0 %vm84_vm0, %v47_v18  ;;  %538 = vmatpush3.bf16.msra.mxu1 %v609_v17 }
  0x25   :  { %539 = vmatprep.subr.bf16.mxu1 %v610_v19  ;;  %573 = vmatprep.subr.bf16.mxu0 %v620_v29 }
  0x27   :  { %574 = vmatpush3.bf16.msra.mxu0 %v620_v29 }
  0x28   :  { %540 = vmatpush3.bf16.msra.mxu1 %v611_v20  ;;  %575 = vmatprep.subr.bf16.mxu0 %v621_v9 }
  0x29   :  { %541 = vmatprep.subr.bf16.mxu1 %v612_v21 }
  0x2b   :  { %576 = vmatpush3.bf16.msra.mxu0 %v621_v9 }
  0x2c   :  { %542 = vmatpush3.bf16.msra.mxu1 %v613_v22  ;;  %577 = vmatprep.subr.bf16.mxu0 %v622_v10 }
  0x2d   :  { %543 = vmatprep.subr.bf16.mxu1 %v614_v23 }
  0x2f   :  { %578 = vmatpush3.bf16.msra.mxu0 %v622_v10 }
  0x30   :  { %544 = vmatpush3.bf16.msra.mxu1 %v615_v24  ;;  %579 = vmatprep.subr.bf16.mxu0 %v623_v11 }
  0x31   :  { %545 = vmatprep.subr.bf16.mxu1 %v616_v25 }
  0x33   :  { %580 = vmatpush3.bf16.msra.mxu0 %v623_v11 }
  0x34   :  { %546 = vmatpush3.bf16.msra.mxu1 %v617_v26  ;;  %581 = vmatprep.subr.bf16.mxu0 %v624_v12 }
  0x37   :  { %582 = vmatpush3.bf16.msra.mxu0 %v624_v12 }
  0x38   :  { %583 = vmatprep.subr.bf16.mxu0 %v625_v13 }
  0x3b   :  { %584 = vmatpush3.bf16.msra.mxu0 %v625_v13 }
  0xef   :  { %v125_v37 = vpop.f32.mrb[0].mxu0 }
  0xf0   :  { %v126_v38 = vadd.f32 %v125_v37, %v57_v35  ;;  %v127_v39 = vpop.f32.mrb[1].mxu0 }
  0xf1   :  { %v128_v40 = vadd.f32 %v127_v39, %v61_v36  ;;  %v129_v41 = vpop.f32.mrb[2].mxu0 }
  0xf2   :  { %v144_v42 = vmul.f32 0.1, %v126_v38  ;;  %v130_v43 = vadd.f32 %v129_v41, %v57_v35  ;;  %v131_v44 = vpop.f32.mrb[3].mxu0  ;;  %v522_v41 = vld [vmem:[%s814_s6] ss:$0 sm:$0xff]  ;;  %s648_s6 = scalar_lea.vmem %s488_s24, 512 }
  0xf3   :  { %v145_v45 = vmul.f32 0.1, %v128_v40  ;;  %v132_v46 = vadd.f32 %v131_v44, %v61_v36  ;;  %p649_p8 = scmp.ne.s32.totalorder %s488_s24, %s648_s6  ;;  %p654_p10 = scmp.lt.s32.totalorder %s648_s6, %s648_s6 }
  0xf4   :  { %v146_v47 = vmul.f32 0.1, %v130_v43  ;;  %v152_v49 = vmax.f32 %v126_v38, %v144_v42 }
  0xf5   :  { %v147_v48 = vmul.f32 0.1, %v132_v46  ;;  %v153_v52 = vmax.f32 %v128_v40, %v145_v45  ;;  %p655_p11 = por %p654_p10, %p653_p9 }
  0xf6   :  { %v154_v50 = vmax.f32 %v130_v43, %v146_v47 }
  0xf7   :  { %v135_v51 = vpop.f32.mrb[4].mxu0  ;;  %v155_v53 = vmax.f32 %v132_v46, %v147_v48  ;;  %p656_p12 = pnand %p655_p11, %p649_p8 }
  0xf8   :  { %v136_v54 = vadd.f32 %v135_v51, %v57_v35  ;;  %v137_v55 = vpop.f32.mrb[5].mxu0  ;;  %v160_v56 = vpack.c.bf16 %v154_v50, %v152_v49 }
  0xf9   :  { %v138_v57 = vadd.f32 %v137_v55, %v61_v36  ;;  %v139_v58 = vpop.f32.mrb[6].mxu0  ;;  %v161_v59 = vpack.c.bf16 %v155_v53, %v153_v52 }
  0xfa   :  { %v148_v60 = vmul.f32 0.1, %v136_v54  ;;  %v140_v61 = vadd.f32 %v139_v58, %v57_v35  ;;  %v141_v62 = vpop.f32.mrb[7].mxu0 }
  0xfb   :  { %v149_v63 = vmul.f32 0.1, %v138_v57  ;;  %v142_v0 = vadd.f32 %v141_v62, %v61_v36  ;;  %331 = vmatprep.mubr.bf16.mxu1 %v161_v59 }
  0xfc   :  { %v150_v1 = vmul.f32 0.1, %v140_v61  ;;  %332 = vmatmul.mubr.bf16.vlgmr.msra.gmra.mrb[0].mxu1 %v160_v56  ;;  %v156_v3 = vmax.f32 %v136_v54, %v148_v60 }
  0xfd   :  { %v151_v2 = vmul.f32 0.1, %v142_v0  ;;  %v157_v5 = vmax.f32 %v138_v57, %v149_v63 }
  0xfe   :  { %v158_v4 = vmax.f32 %v140_v61, %v150_v1 }
  0xff   :  { %v159_v6 = vmax.f32 %v142_v0, %v151_v2 }
 0x100   :  { %v162_v7 = vpack.c.bf16 %v158_v4, %v156_v3 }
 0x101   :  { %v163_v8 = vpack.c.bf16 %v159_v6, %v157_v5 }
 0x103   :  { %339 = vmatprep.mubr.bf16.mxu1 %v163_v8 }
 0x104   :  { %340 = vmatmul.mubr.bf16.gmra.mrb[4].mxu1 %v162_v7 }
 0x1cf   :  { %v547_v14 = vpop.f32.mrb[0].mxu1 }
 0x1d0   :  { %v548_v16 = vpop.f32.mrb[1].mxu1 }
 0x1d1   :  { %v549_v17 = vadd.f32 %v548_v16, %v547_v14  ;;  %v550_v18 = vpop.f32.mrb[2].mxu1 }
 0x1d2   :  { %v551_v19 = vpop.f32.mrb[3].mxu1 }
 0x1d3   :  { %v334_v20 = vadd.f32 %v549_v17, %v505_v15  ;;  %v552_v21 = vadd.f32 %v551_v19, %v550_v18 }
 0x1d5   :  { %v348_v22 = vmul.f32 0.1, %v334_v20  ;;  %v337_v23 = vadd.f32 %v552_v21, %v505_v15 }
 0x1d7   :  { %v349_v24 = vmul.f32 0.1, %v337_v23  ;;  %v553_v25 = vpop.f32.mrb[4].mxu1  ;;  %v352_v27 = vmax.f32 %v334_v20, %v348_v22 }
 0x1d8   :  { %v554_v26 = vpop.f32.mrb[5].mxu1 }
 0x1d9   :  { %v353_v28 = vmax.f32 %v337_v23, %v349_v24  ;;  %v555_v29 = vadd.f32 %v554_v26, %v553_v25  ;;  %v556_v30 = vpop.f32.mrb[6].mxu1 }
 0x1da   :  { %v557_v31 = vpop.f32.mrb[7].mxu1 }
 0x1db   :  { %v342_v32 = vadd.f32 %v555_v29, %v505_v15  ;;  %v558_v33 = vadd.f32 %v557_v31, %v556_v30  ;;  %v356_v34 = vpack.c.bf16 %v353_v28, %v352_v27 }
 0x1dd   :  { %v350_v35 = vmul.f32 0.1, %v342_v32  ;;  %v345_v36 = vadd.f32 %v558_v33, %v505_v15  ;;  %585 = vmatprep.mubr.bf16.mxu0 %v356_v34 }
 0x1df   :  { %v351_v37 = vmul.f32 0.1, %v345_v36  ;;  %v354_v38 = vmax.f32 %v342_v32, %v350_v35 }
 0x1e1   :  { %v355_v39 = vmax.f32 %v345_v36, %v351_v37 }
 0x1e3   :  { %v357_v40 = vpack.c.bf16 %v355_v39, %v354_v38 }
 0x1e5   :  { %586 = vmatmul.mubr.bf16.vlgmr.msra.gmra.mrb[8].mxu0 %v357_v40 }
 0x2b8   :  { %v587_v42 = vpop.f32.mrb[8].mxu0 }
 0x2b9   :  { %v472_v43 = vadd.f32 %v587_v42, %v522_v41  ;;  %v463_v44 = vpop.f32.mrb[9].mxu0 }
 0x2ba   :  { %v464_v45 = vadd.f32 %v522_v41, %v463_v44  ;;  %v588_v46 = vpop.f32.mrb[10].mxu0 }
 0x2bb   :  { %480 = vst.msk [vmem:[#allocation5 + $0x10] sm:$0xff] %vm84_vm0, %v472_v43  ;;  %v475_v47 = vadd.f32 %v588_v46, %v522_v41  ;;  %v466_v48 = vpop.f32.mrb[11].mxu0 }
 0x2bc   :  { %478 = vst.msk [vmem:[#allocation5] sm:$0xff] %vm84_vm0, %v464_v45  ;;  %v467_v49 = vadd.f32 %v522_v41, %v466_v48 }
 0x2bd   :  { %481 = vst.msk [vmem:[#allocation5 + $0x18] sm:$0xff] %vm84_vm0, %v475_v47 }
 0x2be   :  { %479 = vst.msk [vmem:[#allocation5 + $0x8] sm:$0xff] %vm84_vm0, %v467_v49 }
 0x2bf   :  { %659 = shalt.err (!%p656_p12)
}
 0x2c0   :  { %s660_s26 = scalar_lea.hbm %s815_s7, 512 }
 0x2c1   :  { %p661_p13 = scmp.ne.s32.totalorder %s815_s7, %s660_s26  ;;  %p664_p0 = scmp.lt.u32.totalorder %s660_s26, %s815_s7 }
 0x2c3   :  { %p666_p1 = pnand %p664_p0, %p661_p13 }
 0x2c5   :  { %669 = shalt.err (!%p666_p1)
}
 0x2c6   :  { %s679_s30 = smov 128   ;;  %s680_s8 = smov 8  }
 0x2c7   :  { %493 = dma.vmem_to_hbm [thread:$0]  %s488_s24, 512, %s815_s7, [#allocation4], %s679_s30, %s679_s30, %s680_s8  }
 0x2c8   :  { %672 = dma.done.wait [#allocation4], 512  }
 0x2c9   :  { %673 = vsyncadd [#allocation4], 4294966784 }
 0x2ca   :  { %497 = vsyncpa [#allocation3], 1 }
 0x2cb   :  { %498 = vsyncpa [#allocation4], 1 }

</bundles_post_ra>
